<compile_context>
chip_gen: v6e
topology: v6e:2x2x1
jax: 0.10.0
libtpu: 0.0.40
codegen_flags: <defaults>
</compile_context>

<pallas_src>
import jax
import jax.numpy as jnp
from jax.experimental import pallas as pl
from jax.experimental.pallas import tpu as pltpu


def gcn_kernel(a_ref, xw_ref, b_ref, o_ref, acc_ref):
    # a_ref:   (TM, TK)      bf16  -- row/contraction tile of A for the current batch
    # xw_ref:  (TK, out_dim) bf16  -- matching contraction tile of XW = X @ W^T
    # b_ref:   (1, out_dim)  f32   -- bias (tiny, stays resident)
    # o_ref:   (TM, out_dim) f32   -- resident across the contraction (k) axis
    # acc_ref: (TM, out_dim) f32   -- VMEM accumulator scratch
    k = pl.program_id(2)

    @pl.when(k == 0)
    def _():
        acc_ref[...] = jnp.zeros_like(acc_ref)

    acc_ref[...] += jnp.dot(a_ref[...], xw_ref[...],
                            preferred_element_type=jnp.float32)

    @pl.when(k == pl.num_programs(2) - 1)
    def _():
        o_ref[...] = (acc_ref[...] + b_ref[...]).astype(o_ref.dtype)


def _vmem_budget_bytes():
    try:
        cap = pltpu.get_tpu_info().vmem_capacity_bytes
    except Exception:
        cap = 64 * 2**20            # conservative fallback: v7x per-TensorCore VMEM
    return (cap * 3) // 4           # headroom for compiler-internal scratch / metadata


def _pick_tiles(N, out_dim, budget):
    """Largest row tile TM (<=512 preferred) and contraction tile TK that fit VMEM."""
    def need(tm, tk):
        return (2 * tm * tk * 2          # A tile, bf16, double-buffered
                + 2 * tk * out_dim * 2   # XW tile, bf16, double-buffered
                + 2 * tm * out_dim * 4   # out tile, f32, double-buffered
                + tm * out_dim * 4       # f32 accumulator scratch
                + 2 * out_dim * 4)       # bias

    divs = [c for c in (512, 256, 128) if N % c == 0 and c < N]
    tm_cands = divs if (N > 512 and divs) else [N]
    fallback = None
    for tm in tm_cands:                  # keep TM large; tile K before shrinking TM
        for tk in [N] + divs:            # prefer a single contraction step when it fits
            if need(tm, tk) <= budget:
                return tm, tk
            if fallback is None or need(tm, tk) < need(*fallback):
                fallback = (tm, tk)
    # TODO(synk): very large N not divisible by 128 would need ragged (BoundedSlice) tiling.
    return fallback


def gcn_forward(A, X, W, b):
    """A: [B,N,N], X: [B,N,in_dim], W: [out_dim,in_dim] (PyTorch layout), b: [out_dim]."""
    B, N, _ = A.shape
    out_dim = W.shape[0]
    out_dtype = X.dtype

    # Dropout with p=0 is the identity -> no-op.
    # Fold the Linear into the streamed operand (always valid; ideal when
    # min(in_dim, out_dim) << N, which is the GCN regime).
    XW = jnp.einsum("bnd,od->bno", X.astype(jnp.float32), W.astype(jnp.float32))

    # bf16 streams, f32 accumulation on the MXU.
    A_bf = A.astype(jnp.bfloat16)
    XW_bf = XW.astype(jnp.bfloat16)
    b2 = b.astype(jnp.float32).reshape(1, out_dim)

    budget = _vmem_budget_bytes()
    TM, TK = _pick_tiles(N, out_dim, budget)
    grid = (B, N // TM, N // TK)

    cost = pl.CostEstimate(
        flops=2 * B * N * N * out_dim,
        transcendentals=0,
        bytes_accessed=(2 * B * N * N            # A (bf16)
                        + 2 * B * N * out_dim    # XW (bf16)
                        + 4 * B * N * out_dim    # out (f32)
                        + 4 * out_dim),          # bias
    )

    out = pl.pallas_call(
        gcn_kernel,
        out_shape=jax.ShapeDtypeStruct((B, N, out_dim), out_dtype),
        grid_spec=pltpu.PrefetchScalarGridSpec(
            num_scalar_prefetch=0,
            grid=grid,
            in_specs=[
                # A: (TM, TK) tile, batch dim squeezed out of the kernel view.
                pl.BlockSpec((pl.Squeezed(), TM, TK),
                             lambda bi, ti, ki: (bi, ti, ki)),
                # XW: (TK, out_dim) contraction tile; constant across the row-tile axis.
                pl.BlockSpec((pl.Squeezed(), TK, out_dim),
                             lambda bi, ti, ki: (bi, ki, 0)),
                # bias: same tiny block every step (stays resident in VMEM).
                pl.BlockSpec((1, out_dim), lambda bi, ti, ki: (0, 0)),
            ],
            out_specs=pl.BlockSpec((pl.Squeezed(), TM, out_dim),
                                   lambda bi, ti, ki: (bi, ti, 0)),
            scratch_shapes=[pltpu.VMEM((TM, out_dim), jnp.float32)],
        ),
        compiler_params=pltpu.CompilerParams(
            dimension_semantics=("parallel", "parallel", "arbitrary"),
            vmem_limit_bytes=int(budget),
        ),
        cost_estimate=cost,
    )(A_bf, XW_bf, b2)

    return out


def gcn_reference(A, X, W, b):
    # Plain-JAX f32 reference of the PyTorch forward (dropout p=0 is identity).
    AX = jnp.einsum("bnm,bmd->bnd", A, X)
    return jnp.einsum("bnd,od->bno", AX, W) + b


if __name__ == "__main__":
    key = jax.random.PRNGKey(0)
    k_a, k_x, k_w, k_b = jax.random.split(key, 4)

    B, N = 2, 16
    in_dim, out_dim = 8, 32

    A = jax.random.normal(k_a, (B, N, N), dtype=jnp.float32)
    X = jax.random.normal(k_x, (B, N, in_dim), dtype=jnp.float32)
    # Deterministic "Linear" params (PyTorch layout: W is [out_dim, in_dim]).
    W = jax.random.normal(k_w, (out_dim, in_dim), dtype=jnp.float32) * 0.1
    bparam = jax.random.normal(k_b, (out_dim,), dtype=jnp.float32) * 0.1

    out = gcn_forward(A, X, W, bparam)
    out = jax.block_until_ready(out)

    ref = gcn_reference(A, X, W, bparam)
    assert out.shape == (B, N, out_dim)
    assert out.dtype == X.dtype
    # bf16-streamed operands with f32 MXU accumulation -> compare at bf16 tolerance.
    assert jnp.allclose(out, ref, atol=5e-2, rtol=5e-2), \
        float(jnp.max(jnp.abs(out - ref)))

    print("KERNEL_OK")
</pallas_src>

<mosaic_0001>
module attributes {stable_mosaic.version = 11 : i64} {
  func.func @gcn_kernel(%arg0: i32, %arg1: i32, %arg2: i32, %arg3: memref<1x16x16xbf16, #tpu.memory_space<vmem>>, %arg4: memref<1x16x32xbf16, #tpu.memory_space<vmem>>, %arg5: memref<1x32xf32, #tpu.memory_space<vmem>>, %arg6: memref<1x16x32xf32, #tpu.memory_space<vmem>>, %arg7: memref<16x32xf32, #tpu.memory_space<vmem>>) attributes {dimension_semantics = [#tpu.dimension_semantics<parallel>, #tpu.dimension_semantics<parallel>, #tpu.dimension_semantics<arbitrary>], iteration_bounds = array<i64: 2, 1, 1>, scalar_prefetch = 0 : i64, scratch_operands = 1 : i64, tpu.core_type = #tpu.core_type<tc>, window_params = [{transform_indices = @transform_0, window_bounds = array<i64: 1, 16, 16>}, {transform_indices = @transform_1, window_bounds = array<i64: 1, 16, 32>}, {pipeline_mode = #tpu.pipeline_mode<synchronous>, transform_indices = @transform_2, window_bounds = array<i64: 1, 32>}, {transform_indices = @transform_3, window_bounds = array<i64: 1, 16, 32>}]} {
    %c0_i32 = arith.constant 0 : i32
    %0 = arith.cmpi eq, %arg2, %c0_i32 : i32
    %1 = arith.extui %0 : i1 to i32
    %c0_i32_0 = arith.constant 0 : i32
    %2 = arith.cmpi ne, %1, %c0_i32_0 : i32
    scf.if %2 {
      %cst_12 = arith.constant 0.000000e+00 : f32
      %14 = vector.broadcast %cst_12 : f32 to vector<16x32xf32>
      %c0_13 = arith.constant 0 : index
      %c0_14 = arith.constant 0 : index
      %15 = vector.load %arg7[%c0_13, %c0_14] : memref<16x32xf32, #tpu.memory_space<vmem>>, vector<16x32xf32>
      tpu.vector_store %arg7[%c0_13, %c0_14], %14 {strides = array<i32>} : memref<16x32xf32, #tpu.memory_space<vmem>>, vector<16x32xf32>,
    } else {
    }
    %c0 = arith.constant 0 : index
    %c0_1 = arith.constant 0 : index
    %3 = vector.load %arg7[%c0, %c0_1] : memref<16x32xf32, #tpu.memory_space<vmem>>, vector<16x32xf32>
    %c0_2 = arith.constant 0 : index
    %c0_3 = arith.constant 0 : index
    %c0_4 = arith.constant 0 : index
    %4 = vector.load %arg3[%c0_2, %c0_3, %c0_4] : memref<1x16x16xbf16, #tpu.memory_space<vmem>>, vector<1x16x16xbf16>
    %5 = vector.shape_cast %4 : vector<1x16x16xbf16> to vector<16x16xbf16>
    %c0_5 = arith.constant 0 : index
    %c0_6 = arith.constant 0 : index
    %c0_7 = arith.constant 0 : index
    %6 = vector.load %arg4[%c0_5, %c0_6, %c0_7] : memref<1x16x32xbf16, #tpu.memory_space<vmem>>, vector<1x16x32xbf16>
    %7 = vector.shape_cast %6 : vector<1x16x32xbf16> to vector<16x32xbf16>
    %cst = arith.constant dense<0.000000e+00> : vector<16x32xf32>
    %8 = tpu.matmul %5, %7, %cst {dimension_numbers = #tpu.dot_dimension_numbers<[1], [0], [0], [1], [0, 0, 1, 1], [], []>} : vector<16x16xbf16>, vector<16x32xbf16>, vector<16x32xf32> -> vector<16x32xf32>
    %9 = arith.addf %3, %8 : vector<16x32xf32>
    %c0_8 = arith.constant 0 : index
    %c0_9 = arith.constant 0 : index
    %10 = vector.load %arg7[%c0_8, %c0_9] : memref<16x32xf32, #tpu.memory_space<vmem>>, vector<16x32xf32>
    tpu.vector_store %arg7[%c0_8, %c0_9], %9 {strides = array<i32>} : memref<16x32xf32, #tpu.memory_space<vmem>>, vector<16x32xf32>,
    %c0_i32_10 = arith.constant 0 : i32
    %11 = arith.cmpi eq, %arg2, %c0_i32_10 : i32
    %12 = arith.extui %11 : i1 to i32
    %c0_i32_11 = arith.constant 0 : i32
    %13 = arith.cmpi ne, %12, %c0_i32_11 : i32
    scf.if %13 {
      %c0_12 = arith.constant 0 : index
      %c0_13 = arith.constant 0 : index
      %14 = vector.load %arg7[%c0_12, %c0_13] : memref<16x32xf32, #tpu.memory_space<vmem>>, vector<16x32xf32>
      %c0_14 = arith.constant 0 : index
      %c0_15 = arith.constant 0 : index
      %15 = vector.load %arg5[%c0_14, %c0_15] : memref<1x32xf32, #tpu.memory_space<vmem>>, vector<1x32xf32>
      %16 = vector.broadcast %15 : vector<1x32xf32> to vector<16x32xf32>
      %17 = arith.addf %14, %16 : vector<16x32xf32>
      %c0_16 = arith.constant 0 : index
      %c0_17 = arith.constant 0 : index
      %c0_18 = arith.constant 0 : index
      %18 = vector.load %arg6[%c0_16, %c0_17, %c0_18] : memref<1x16x32xf32, #tpu.memory_space<vmem>>, vector<1x16x32xf32>
      %19 = vector.shape_cast %18 : vector<1x16x32xf32> to vector<16x32xf32>
      %20 = vector.shape_cast %17 : vector<16x32xf32> to vector<1x16x32xf32>
      tpu.vector_store %arg6[%c0_16, %c0_17, %c0_18], %20 {strides = array<i32>} : memref<1x16x32xf32, #tpu.memory_space<vmem>>, vector<1x16x32xf32>,
    } else {
    }
    return
  }
  func.func @transform_0(%arg0: i32, %arg1: i32, %arg2: i32) -> (i32, i32, i32) {
    %c0_i32 = arith.constant 0 : i32
    return %arg0, %arg1, %arg2 : i32, i32, i32
  }
  func.func @transform_1(%arg0: i32, %arg1: i32, %arg2: i32) -> (i32, i32, i32) {
    %c0_i32 = arith.constant 0 : i32
    %c0_i32_0 = arith.constant 0 : i32
    return %arg0, %arg2, %c0_i32 : i32, i32, i32
  }
  func.func @transform_2(%arg0: i32, %arg1: i32, %arg2: i32) -> (i32, i32) {
    %c0_i32 = arith.constant 0 : i32
    %c0_i32_0 = arith.constant 0 : i32
    %c0_i32_1 = arith.constant 0 : i32
    return %c0_i32, %c0_i32_0 : i32, i32
  }
  func.func @transform_3(%arg0: i32, %arg1: i32, %arg2: i32) -> (i32, i32, i32) {
    %c0_i32 = arith.constant 0 : i32
    %c0_i32_0 = arith.constant 0 : i32
    return %arg0, %arg1, %c0_i32 : i32, i32, i32
  }
}

</mosaic_0001>

<bundles_post_ra>
// kernel: tpu_custom_call.1
= control target key start
LH: loop header
LB: loop body
LE: loop exit
PB: predicated region body
PF: predicated region fallthrough
CT: control target
= control target key end

     0   :  { %s959_s0 = inlined_call_operand.hbm [shape: bf16[2,16,16], index: 0, kind: input, shape index: {}]   ;;  %s960_s1 = inlined_call_operand.hbm [shape: bf16[2,16,32], index: 1, kind: input, shape index: {}]   ;;  %s961_s2 = inlined_call_operand.vmem [shape: f32[1,32], index: 2, kind: input, shape index: {}]   ;;  %s962_s3 = inlined_call_operand.hbm [shape: f32[2,16,32], index: 3, kind: output, shape index: {}]  }
   0x1   :  { %963 = sst [smem:[#allocation12_spill]] %s959_s0 }
   0x2   :  { %8 = vsyncpa [#allocation4], 0 }
   0x3   :  { %10 = vsyncpa [#allocation4 + $0x1], 0 }
   0x4   :  { %11 = vsyncpa [#allocation7], 0 }
   0x5   :  { %13 = vsyncpa [#allocation7 + $0x1], 0 }
   0x6   :  { %14 = vsyncpa [#allocation5], 0 }
   0x7   :  { %16 = vsyncpa [#allocation5 + $0x1], 0  ;;  %s768_s12 = smov 0   ;;  %s770_s13 = smov 0  }
   0x8   :  { %s772_s14 = smov 0   ;;  %s774_s15 = smov 0  }
   0x9   :  { %s776_s16 = smov 0   ;;  %s778_s17 = smov 0  }
   0xa LB: > { %s488_s18 = sadd.s32 4294967295, %s737_s17   ;;  %s489_s19 = sadd.s32 4294967294, %s737_s17   ;;  %s737_s17 = sphi %s778_s17, %s22_s17   ;;  %s733_s16 = sphi %s776_s16, %s975_s16   ;;  %s729_s15 = sphi %s774_s15, %s974_s15   ;;  %s725_s14 = sphi %s772_s14, %s973_s14   ;;  %s721_s13 = sphi %s770_s13, %s972_s13   ;;  %s717_s12 = sphi %s768_s12, %s971_s12  }
   0xb   : > { %s41_s20 = sadd.s32 1, %s733_s16  ;;  %s52_s21 = sadd.s32 1, %s725_s14 }
   0xc   : > { %p43_p0 = scmp.ge.s32.totalorder %s41_s20, 2  ;;  %p59_p1 = scmp.ne.s32.totalorder %s725_s14, %s721_s13 }
   0xd   : > { %p60_p2 = scmp.eq.s32.totalorder %s737_s17, 0  ;;  %p65_p3 = scmp.ne.s32.totalorder %s721_s13, %s717_s12 }
   0xe   : > { %s977_s20 = smov (%p43_p0, %s41_s20), 0  ;;  %p66_p5 = scmp.eq.s32.totalorder %s488_s18, 0 }
   0xf   : > { %p809_p4 = por %p60_p2, %p59_p1  ;;  %s45_s23 = ssub.s32 %s733_s16, %s977_s20 }
  0x10   : > { %p140_p6 = scmp.eq.s32.totalorder %s488_s18, 1  ;;  %p50_p7 = scmp.eq.s32.totalorder %s45_s23, 0 }
  0x11   : > { %p815_p8 = por %p66_p5, %p65_p3  ;;  %p146_p10 = scmp.eq.s32.totalorder %s489_s19, 1 }
  0x12   : > { %p819_p9 = por %p140_p6, %p59_p1  ;;  %p491_p12 = scmp.ge.s32.totalorder %s737_s17, 2 }
  0x13   : > { %s824_s26 = scalar_select %p50_p7, %s725_s14, %s52_s21  }
  0x14   : > { %p826_p11 = por %p146_p10, %p65_p3  ;;  %p539_p13 = scmp.lt.s32.totalorder %s737_s17, 2 }
  0x15   : > { %s833_s28 = sand.u32 1, %s725_s14   ;;  %s511_s30 = sshll.u32 %s733_s16, 7 }
  0x16   : > { %s492_s29 = sshll.u32 %s833_s28, 3  ;;  %s968_s0 = sld [smem:[#allocation12_spill]] }
  0x17   : > { %s173_s7 = scalar_lea.vmem [#allocation3], %s492_s29  ;;  %p846_p0 = pnand %p539_p13, %p809_p4 }
  0x18   : > { %s183_s8 = sshll.u32 %s173_s7, 4  ;;  %p498_p1 = scmp.ge.s32.totalorder %s737_s17, 1  ;;  %s184_s8 = int_to_ptr.vmem [resolvable:$true] %s183_s8 }
  0x19   : > { %s170_s10 = scalar_lea.sflag [#allocation4], %s833_s28  ;;  %p599_p2 = pneg %p846_p0 }
  0x1a   : > { %s610_s11 = scalar_lea.vmem %s184_s8, 128  ;;  %s739_s18 = smov [#allocation3]  }
  0x1b   : > { %p611_p3 = scmp.ne.s32.totalorder %s184_s8, %s610_s11  ;;  %s615_s19 = sshll.u32 %s739_s18, 4  ;;  %s616_s19 = int_to_ptr.vmem [resolvable:$false] %s615_s19 }
  0x1c   : > { %s182_s6 = scalar_lea.hbm %s968_s0, %s511_s30  ;;  %s617_s21 = scalar_lea.vmem %s616_s19, 256 }
  0x1d   : > { %p613_p5 = pnand %p611_p3, %p599_p2  ;;  %p618_p4 = scmp.lt.s32.totalorder %s184_s8, %s616_s19 }
  0x1e   : > { %p619_p7 = scmp.lt.s32.totalorder %s617_s21, %s610_s11 }
  0x1f   : > { %p614_p6 = pneg %p613_p5 }
  0x20   : > { %p620_p10 = por %p619_p7, %p618_p4 }
  0x22   : > { %p621_p13 = pnand %p620_p10, %p614_p6 }
  0x24   : > { %624 = shalt.err (!%p621_p13)
}
  0x25   : > { %s740_s22 = smov 64   ;;  %s741_s23 = smov 4  }
  0x26   : > { %531 = dma.hbm_to_vmem [thread:$0]  (!%p846_p0), %s182_s6, 128, %s184_s8, %s170_s10, %s740_s22, %s740_s22, %s741_s23  }
  0x27   : > { %p214_p3 = scmp.lt.s32.totalorder %s737_s17, 3  ;;  %s205_s7 = scalar_lea.hbm %s960_s1, %s511_s30 }
  0x28   : > { %s197_s18 = scalar_lea.vmem [#allocation6], %s492_s29  ;;  %s194_s21 = scalar_lea.sflag [#allocation7], %s833_s28 }
  0x29   : > { %p867_p5 = pnand %p498_p1, %p214_p3  ;;  %s206_s19 = sshll.u32 %s197_s18, 4  ;;  %s207_s19 = int_to_ptr.vmem [resolvable:$true] %s206_s19 }
  0x2a   : > { %s638_s0 = scalar_lea.vmem %s207_s19, 128  ;;  %s742_s6 = smov [#allocation6]  }
  0x2b   : > { %p639_p6 = scmp.ne.s32.totalorder %s207_s19, %s638_s0  ;;  %s643_s8 = sshll.u32 %s742_s6, 4  ;;  %s644_s8 = int_to_ptr.vmem [resolvable:$false] %s643_s8 }
  0x2c   : > { %s645_s30 = scalar_lea.vmem %s644_s8, 256  ;;  %p646_p10 = scmp.lt.s32.totalorder %s207_s19, %s644_s8 }
  0x2d   : > { %p641_p4 = pnand %p639_p6, %p599_p2  ;;  %p647_p1 = scmp.lt.s32.totalorder %s645_s30, %s638_s0 }
  0x2f   : > { %p642_p7 = pneg %p641_p4  ;;  %p648_p13 = por %p647_p1, %p646_p10 }
  0x31   : > { %p649_p3 = pnand %p648_p13, %p642_p7 }
  0x33   : > { %652 = shalt.err (!%p649_p3)
}
  0x34   : > { %534 = dma.hbm_to_vmem [thread:$0]  (!%p846_p0), %s205_s7, 128, %s207_s19, %s194_s21, %s740_s22, %s740_s22, %s741_s23  }
  0x35   : > { %218 = sbr.rel (%p867_p5) target bundleno = 289 (0x121), region = 32  ;;  %s882_s28 = sand.u32 (!%p867_p5), 1, %s721_s13  }
  0x36   : > { %s499_s29 = sshll.u32 (!%p867_p5), %s882_s28, 3  ;;  %s221_s10 = scalar_lea.sflag (!%p867_p5), [#allocation4], %s882_s28 }
  0x37   : > { %s224_s4 = scalar_lea.vmem (!%p867_p5), [#allocation3], %s499_s29 }
  0x3a   : > { %704 = dma.done.wait (%p815_p8), %s221_s10, 128  }
  0x3b   : > { %706 = vsyncadd (%p815_p8), %s221_s10, 4294967168  ;;  %s230_s0 = scalar_lea.sflag [#allocation7], %s882_s28  ;;  %s233_s9 = scalar_lea.vmem [#allocation6], %s499_s29 }
  0x3c   : > { %708 = dma.done.wait (%p815_p8), %s230_s0, 128  }
  0x3d   : > { %710 = vsyncadd (%p815_p8), %s230_s0, 4294967168  ;;  %vm269_vm0 = vcmask 261120   ;;  %v743_v0 = vmov 0.0   ;;  %vm744_vm1 = vmmov 0   ;;  %v595_v1 = vld [vmem:[%s233_s9] sm:$0xff]   ;;  %v596_v2 = vld [vmem:[%s224_s4] sm:$0xff]  }
  0x3e   : > { %270 = vst.msk [vmem:[#allocation2] sm:$0xff] %vm269_vm0, %v743_v0  ;;  %271 = vst.msk [vmem:[#allocation2 + $0x8] sm:$0xff] %vm269_vm0, %v743_v0  ;;  %516 = vmatprep.subr.bf16.mxu0 %v743_v0  ;;  %518 = vmatprep.mubr.msk.bf16.mxu0 %vm744_vm1, %v743_v0  ;;  %vm289_vm2 = vcmask 130048   ;;  %s501_s24 = sshll.u32 %s882_s28, 4  ;;  %v505_v11 = vld [vmem:[%s961_s2] ss:$0 sm:$0xff] }
  0x3f   : > { %517 = vmatpush3.bf16.msra.mxu0 %v595_v1  ;;  %s513_s5 = sshll.u32 %s729_s15, 8  ;;  %s260_s7 = scalar_lea.vmem [#allocation8], %s501_s24 }
  0x40   : > { %s371_s11 = sshll.u32 %s260_s7, 4  ;;  %s908_s21 = scalar_lea.hbm %s962_s3, %s513_s5  ;;  %s910_s11 = int_to_ptr.vmem [resolvable:$true] %s371_s11 }
  0x41   : > { %s356_s6 = scalar_lea.sflag [#allocation5], %s882_s28  ;;  %s653_s15 = scalar_lea.vmem %s910_s11, 256 }
  0x42   : > { %519 = vmatmul.mubr.msk.bf16.vlgmr.msra.gmra.mxu0 %vm289_vm2, %v596_v2  ;;  %p654_p8 = scmp.ne.s32.totalorder %s910_s11, %s653_s15  ;;  %s745_s8 = smov [#allocation8]  }
  0x43   : > { %s657_s30 = sshll.u32 %s745_s8, 4  ;;  %s658_s30 = int_to_ptr.vmem [resolvable:$false] %s657_s30 }
  0x44   : > { %p655_p0 = pnand %p654_p8, %p819_p9  ;;  %s659_s29 = scalar_lea.vmem %s658_s30, 512 }
  0x45   : > { %v272_v3 = vld [vmem:[#allocation2] sm:$0xff]  ;;  %v273_v7 = vld [vmem:[#allocation2 + $0x8] sm:$0xff]  ;;  %p660_p5 = scmp.lt.s32.totalorder %s910_s11, %s658_s30  ;;  %p661_p6 = scmp.lt.s32.totalorder %s659_s29, %s653_s15 }
  0x46   : > { %p656_p2 = pneg %p655_p0 }
  0x47   : > { %p662_p4 = por %p661_p6, %p660_p5 }
  0x49   : > { %p663_p7 = pnand %p662_p4, %p656_p2 }
 0x102   : > { %v327_v4 = vpop.f32.mrf.mxu0 }
 0x103   : > { %v334_v5 = vadd.f32 %v327_v4, %v272_v3 }
 0x104   : > { %v520_v6 = vpop.f32.mrf.mxu0 }
 0x105   : > { %337 = vst.msk [vmem:[#allocation2] sm:$0xff] %vm269_vm0, %v334_v5 }
 0x106   : > { %v330_v8 = vpop.f32.mrf.mxu0 }
 0x107   : > { %v335_v9 = vadd.f32 %v330_v8, %v273_v7 }
 0x108   : > { %v521_v10 = vpop.f32.mrf.mxu0 }
 0x109   : > { %338 = vst.msk [vmem:[#allocation2 + $0x8] sm:$0xff] %vm269_vm0, %v335_v9 }
 0x10c   : > { %v342_v12 = vld [vmem:[#allocation2] sm:$0xff] }
 0x10d   : > { %v351_v13 = vadd.f32 %v505_v11, %v342_v12 }
 0x10f   : > { %353 = vst.msk [vmem:[%s260_s7] sm:$0xff] %vm269_vm0, %v351_v13 }
 0x110   : > { %v343_v14 = vld [vmem:[#allocation2 + $0x8] sm:$0xff] }
 0x111   : > { %v352_v15 = vadd.f32 %v505_v11, %v343_v14 }
 0x113   : > { %354 = vst.msk [vmem:[%s260_s7 + $0x8] sm:$0xff] %vm269_vm0, %v352_v15 }
 0x114   : > { %666 = shalt.err (!%p663_p7)
}
 0x115   : > { %s667_s10 = scalar_lea.hbm %s908_s21, 256  ;;  %s671_s9 = scalar_lea.hbm %s962_s3, 512 }
 0x116   : > { %p668_p10 = scmp.ne.s32.totalorder %s908_s21, %s667_s10  ;;  %p672_p3 = scmp.lt.s32.totalorder %s908_s21, %s962_s3 }
 0x117   : > { %p673_p8 = scmp.lt.s32.totalorder %s671_s9, %s667_s10 }
 0x118   : > { %p669_p1 = pnand %p668_p10, %p819_p9 }
 0x119   : > { %p674_p0 = por %p673_p8, %p672_p3 }
 0x11a   : > { %p670_p13 = pneg %p669_p1 }
 0x11c   : > { %p675_p2 = pnand %p674_p0, %p670_p13 }
 0x11e   : > { %678 = shalt.err (!%p675_p2)
}
 0x11f   : > { %s746_s23 = smov 128   ;;  %s747_s5 = smov 8  }
 0x120   : > { %526 = dma.vmem_to_hbm [thread:$0]  (%p819_p9), %s910_s11, 256, %s908_s21, %s356_s6, %s746_s23, %s746_s23, %s747_s5  }
 0x121 PF: > { %s386_s7 = sand.u32 1, %s717_s12   ;;  %p536_p5 = pnand %p491_p12, %p826_p11 }
 0x122   : > { %s387_s18 = scalar_lea.sflag [#allocation5], %s386_s7 }
 0x123   : > { %p537_p6 = pneg %p536_p5 }
 0x125   : > { %712 = dma.done.wait (%p537_p6), %s387_s18, 256  }
 0x126   : > { %714 = vsyncadd (%p537_p6), %s387_s18, 4294967040  ;;  %s22_s17 = sadd.s32 1, %s737_s17   ;;  %s971_s12 = smov %s721_s13 }
 0x127   : > { %p19_p4 = scmp.ge.s32.totalorder %s22_s17, 4   ;;  %s972_s13 = smov %s725_s14 }
 0x128   : > { %s973_s14 = smov %s824_s26  ;;  %s974_s15 = smov %s733_s16 }
 0x129   : > { %s975_s16 = smov %s977_s20  ;;  %21 = sbr.rel (!%p19_p4) target bundleno = 10 (0xa), region = 98 }
 0x12e   :  { %392 = vsyncpa [#allocation4], 1 }
 0x12f   :  { %394 = vsyncpa [#allocation4 + $0x1], 1 }
 0x130   :  { %395 = vsyncpa [#allocation7], 1 }
 0x131   :  { %397 = vsyncpa [#allocation7 + $0x1], 1 }
 0x132   :  { %398 = vsyncpa [#allocation5], 1 }
 0x133   :  { %400 = vsyncpa [#allocation5 + $0x1], 1 }

</bundles_post_ra>
